<compile_context>
chip_gen: v5e
topology: v5e:2x2
jax: 0.10.0
libtpu: 0.0.40
codegen_flags: <defaults>
</compile_context>

<pallas_src>
import functools

import jax
import jax.numpy as jnp
from jax.experimental import pallas as pl
from jax.experimental.pallas import tpu as pltpu


def _bottleneck_kernel(var_weight, H, x_ref, w_ref, bk_ref, bv_ref, expand_ref,
                       eps_ref, out_ref):
    """One (TB, T, D) batch slab per grid step.

    x_ref:      (TB, T, D)     encoding slab (bf16 by default)
    w_ref:      (D, 2D+2H)     fused [wv_mu | wv_lv | wk_mu | wk_lv] weights
    bk_ref:     (1, 2H)        fused key bias (f32)
    bv_ref:     (1, 2D)        fused value bias (f32)
    expand_ref: (2H, 2D)       head -> dim expansion matrix (same dtype as w)
    eps_ref:    (TB, 1, D)     reparameterization noise (f32)
    out_ref:    (TB, 1, 3D)    packed [post | mu | kl (lane-broadcast)] (f32)
    """
    TB, T, D = x_ref.shape
    H2, D2 = 2 * H, 2 * D

    # Flatten batch*seq so the MXU sees TB*T rows.  (Keep T a multiple of the sublane
    # tile at real shapes so this merge is layout-free.)
    x2 = x_ref[...].reshape(TB * T, D)

    # --- single fused matmul: [values (2D lanes) | scores (2H lanes)], f32 accumulate ---
    proj = jnp.dot(x2, w_ref[...], preferred_element_type=jnp.float32)   # (TB*T, 2D+2H)
    vals = proj[:, :D2]                                # value bias added after pooling
    scores = proj[:, D2:] + bk_ref[...]                # (TB*T, 2H)

    # --- softmax over the sequence axis (exact divide on the tiny (TB,1,2H) denom) ---
    scores = scores.reshape(TB, T, H2)
    m = jnp.max(scores, axis=1, keepdims=True)
    e = jnp.exp(scores - m)
    denom = jnp.sum(e, axis=1, keepdims=True)          # (TB, 1, 2H)
    attn = e * (1.0 / denom)                           # (TB, T, 2H)

    # --- head -> dim expansion on the MXU (precomputed bf16 constant) ---
    attn_full = jnp.dot(attn.astype(expand_ref.dtype).reshape(TB * T, H2),
                        expand_ref[...],
                        preferred_element_type=jnp.float32)              # (TB*T, 2D)

    # TODO(synk): for large T accumulate this reduction over T-chunks (lax.fori_loop
    # with a (TB, 2D) accumulator) to bound the (TB*T, 2D) live working set.
    pooled = jnp.sum((attn_full * vals).reshape(TB, T, D2), axis=1)      # (TB, 2D)
    pooled = pooled + bv_ref[...]          # softmax weights sum to 1 -> bias hoisted here

    mu = pooled[:, :D]
    logvar = pooled[:, D:]

    eps = eps_ref[...].reshape(TB, D).astype(jnp.float32)
    std = jnp.exp(0.5 * logvar)
    exp_logvar = std * std                 # == exp(logvar), reuses the EUP result
    post = mu + eps * std * var_weight     # reparameterize_gaussian
    kl = -0.5 * jnp.sum(1.0 + logvar - mu * mu - exp_logvar,
                        axis=-1, keepdims=True)                           # (TB, 1)

    packed = jnp.concatenate(
        [post, mu, jnp.broadcast_to(kl, (TB, D))], axis=-1)               # (TB, 3D)
    out_ref[...] = packed.reshape(TB, 1, 3 * D).astype(out_ref.dtype)


def _pick_block_b(B, max_tb=8):
    """Largest batch block <= max_tb dividing B, preferring >= 2 grid steps so both
    v7x TensorCores get work.  On single-core v5e/v6e pass block_b=B (or raise max_tb)
    to amortize the ~0.35us per-grid-step overhead and maximize MXU row fill."""
    best = None
    for tb in range(1, min(B, max_tb) + 1):
        if B % tb == 0 and B // tb >= 2:
            best = tb
    if best is None:      # e.g. B == 1
        best = 1
    return best


def bottleneck_forward(encoding, params, eps, memory, global_step, *,
                       num_heads, prior_var_weight=1.0, training=True,
                       kl_warmup_steps=0, kl_weight_mult=1.0,
                       block_b=None, matmul_dtype=jnp.bfloat16):
    """Pallas implementation of BottleneckPart.forward for the VAE+pooling config."""
    B, T, D = encoding.shape
    H = num_heads
    assert D % H == 0
    dph = D // H

    # var_weight: prior_var_weight * (1.0 if training else 0.0)  (vae_use_map eval path)
    var_weight = float(prior_var_weight) * (1.0 if training else 0.0)

    mm_dtype = jnp.dtype(matmul_dtype) if matmul_dtype is not None else encoding.dtype

    # One fused projection matrix: [values_mu | values_lv | keys_mu | keys_lv].
    # (In production prepare these fused weights once at load time, not per forward.)
    w = jnp.concatenate([params["wv_mu"], params["wv_lv"],
                         params["wk_mu"], params["wk_lv"]], axis=1).astype(mm_dtype)
    bk = jnp.concatenate([params["bk_mu"], params["bk_lv"]], axis=1).astype(jnp.float32)
    bv = jnp.concatenate([params["bv_mu"], params["bv_lv"]], axis=1).astype(jnp.float32)

    # Head -> dim expansion matrix (head-major head concat, identical to the PyTorch
    # view/transpose/flatten), built once outside the kernel.
    col_head = jax.lax.broadcasted_iota(jnp.int32, (2 * H, 2 * D), 1) // dph
    row_head = jax.lax.broadcasted_iota(jnp.int32, (2 * H, 2 * D), 0)
    expand = (col_head == row_head).astype(mm_dtype)

    x = encoding.astype(mm_dtype)          # bf16 slab: halves HBM DMA + VMEM footprint
    eps = eps.astype(jnp.float32)

    if block_b is None:
        block_b = _pick_block_b(B)
    assert B % block_b == 0
    grid = (B // block_b,)

    kernel = functools.partial(_bottleneck_kernel, var_weight, H)

    nproj = 2 * D + 2 * H
    in_specs = [
        pl.BlockSpec((block_b, T, D), lambda b: (b, 0, 0)),      # encoding slab
        pl.BlockSpec((D, nproj), lambda b: (0, 0)),              # fused proj weights
        pl.BlockSpec((1, 2 * H), lambda b: (0, 0)),              # fused key bias
        pl.BlockSpec((1, 2 * D), lambda b: (0, 0)),              # fused value bias
        pl.BlockSpec((2 * H, 2 * D), lambda b: (0, 0)),          # head->dim expansion
        pl.BlockSpec((block_b, 1, D), lambda b: (b, 0, 0)),      # eps noise
    ]
    # NOTE: the weight/bias/expansion inputs are grid-invariant; on a v7x VMEM budget
    # they can additionally be single-buffered (pipeline_mode=pl.Buffered(1)).
    out_specs = pl.BlockSpec((block_b, 1, 3 * D), lambda b: (b, 0, 0))
    out_shape = jax.ShapeDtypeStruct((B, 1, 3 * D), jnp.float32)

    itemsize = x.dtype.itemsize
    cost = pl.CostEstimate(
        flops=2 * B * T * D * nproj + 2 * B * T * (2 * H) * (2 * D),
        transcendentals=B * T * 2 * H + B * D,
        bytes_accessed=(B * T * D * itemsize + B * D * 4 + B * 3 * D * 4
                        + (D * nproj + 4 * H * D) * itemsize + 6 * D * 4))

    # Explicit VMEM budget: generous per-step estimate, capped at 48 MiB so it is a
    # valid request on v7x (64 MiB physical) as well as v5e/v6e (128 MiB).
    est = (2 * block_b * T * D * itemsize                      # double-buffered slab
           + 2 * block_b * (D + 3 * D) * 4                     # eps + packed output
           + 2 * (D * nproj + 4 * H * D) * itemsize            # weights + expansion
           + 6 * block_b * T * nproj * 4)                      # f32 intermediates headroom
    vmem_limit = int(min(max(2 * est, 32 * 1024 * 1024), 48 * 1024 * 1024))

    out = pl.pallas_call(
        kernel,
        grid=grid,
        in_specs=in_specs,
        out_specs=out_specs,
        out_shape=out_shape,
        compiler_params=pltpu.CompilerParams(
            dimension_semantics=("parallel",),
            vmem_limit_bytes=vmem_limit),
        cost_estimate=cost,
    )(x, w, bk, bv, expand, eps)

    encoding_post = out[:, :, 0:D].astype(encoding.dtype)        # (B, 1, D)
    encoding_pooled = out[:, :, D:2 * D].astype(encoding.dtype)  # (B, 1, D) == mu
    kl_loss = out[:, 0, 2 * D]                                   # (B,)

    # kl warmup schedule (python scalars, same as the module)
    if global_step >= 2 * kl_warmup_steps:
        kl_weight = 1.0
    elif global_step < kl_warmup_steps:
        kl_weight = 0.0
    else:
        kl_weight = float(global_step - kl_warmup_steps) / (1.0 * kl_warmup_steps)
    kl_weight *= kl_weight_mult

    if "loss" not in memory:
        memory["loss"] = 0
    memory["loss"] = memory["loss"] + kl_loss * kl_weight

    return encoding_post, encoding_pooled, memory


def _reference_forward(encoding, params, eps, num_heads, var_weight,
                       matmul_dtype=jnp.bfloat16):
    """Pure-JAX reference of the same math.

    MXU operands are rounded to the kernel's matmul dtype (bf16) and contracted with
    HIGHEST precision / f32 accumulation, so the check isolates semantics rather than
    dtype drift; softmax/reparam/KL stay f32 exactly as in the kernel."""
    B, T, D = encoding.shape
    H = num_heads
    dph = D // H
    hi = jax.lax.Precision.HIGHEST
    enc = encoding.astype(matmul_dtype).astype(jnp.float32)

    def pool(wk, bk, wv, bv):
        wk = wk.astype(matmul_dtype).astype(jnp.float32)
        wv = wv.astype(matmul_dtype).astype(jnp.float32)
        scores = jnp.dot(enc, wk, precision=hi) + bk                 # (B, T, H)
        m = jnp.max(scores, axis=1, keepdims=True)
        e = jnp.exp(scores - m)
        attn = e * (1.0 / jnp.sum(e, axis=1, keepdims=True))          # softmax over T
        attn = attn.astype(matmul_dtype).astype(jnp.float32)          # kernel pools bf16 attn
        vals = (jnp.dot(enc, wv, precision=hi) + bv).reshape(B, T, H, dph)
        ctx = jnp.einsum("bth,bthd->bhd", attn, vals, precision=hi)   # (B, H, dph)
        return ctx.reshape(B, D)

    mu = pool(params["wk_mu"], params["bk_mu"], params["wv_mu"], params["bv_mu"])[:, None, :]
    logvar = pool(params["wk_lv"], params["bk_lv"], params["wv_lv"], params["bv_lv"])[:, None, :]
    post = mu + eps * jnp.exp(0.5 * logvar) * var_weight
    kl = -0.5 * jnp.sum(1 + logvar - mu ** 2 - jnp.exp(logvar), axis=-1)  # (B, 1)
    return post, mu, jnp.mean(kl, axis=1)


if __name__ == "__main__":
    B, T, D, H = 8, 8, 32, 4   # batch, seq, embedding_dim, num_heads (small, exercises batch-blocking)

    key = jax.random.PRNGKey(0)
    ks = jax.random.split(key, 10)
    encoding = jax.random.normal(ks[0], (B, T, D), dtype=jnp.float32)
    eps = jax.random.normal(ks[1], (B, 1, D), dtype=jnp.float32)  # reparameterization noise

    scale = 0.1
    # Synthetic deterministic params stored as (in, out); PyTorch stores (out, in) and
    # transposes at matmul time — same math, synthetic weights so layout choice is free.
    params = {
        "wk_mu": scale * jax.random.normal(ks[2], (D, H), dtype=jnp.float32),
        "bk_mu": scale * jax.random.normal(ks[3], (1, H), dtype=jnp.float32),
        "wv_mu": scale * jax.random.normal(ks[4], (D, D), dtype=jnp.float32),
        "bv_mu": scale * jax.random.normal(ks[5], (1, D), dtype=jnp.float32),
        "wk_lv": scale * jax.random.normal(ks[6], (D, H), dtype=jnp.float32),
        "bk_lv": scale * jax.random.normal(ks[7], (1, H), dtype=jnp.float32),
        "wv_lv": scale * jax.random.normal(ks[8], (D, D), dtype=jnp.float32),
        "bv_lv": scale * jax.random.normal(ks[9], (1, D), dtype=jnp.float32),
    }

    memory = {}
    encoding_post, encoding_pooled, memory = bottleneck_forward(
        encoding, params, eps, memory, global_step=100,
        num_heads=H, prior_var_weight=1.0, training=True,
        kl_warmup_steps=0, kl_weight_mult=1.0)

    jax.block_until_ready((encoding_post, encoding_pooled, memory["loss"]))

    # Correctness check against a precision-matched pure-JAX reference.  Tolerances
    # cover the bf16 MXU operands and the value-bias hoist (both ~1e-3-level effects).
    ref_post, ref_pooled, ref_kl = _reference_forward(encoding, params, eps, H, var_weight=1.0)
    assert encoding_post.shape == (B, 1, D) and encoding_pooled.shape == (B, 1, D)
    assert memory["loss"].shape == (B,)
    assert jnp.allclose(encoding_post, ref_post, atol=1e-2, rtol=1e-2)
    assert jnp.allclose(encoding_pooled, ref_pooled, atol=1e-2, rtol=1e-2)
    assert jnp.allclose(memory["loss"], ref_kl, atol=5e-2, rtol=1e-2)

    print("KERNEL_OK")
</pallas_src>

<mosaic_0001>
module attributes {stable_mosaic.version = 11 : i64} {
  func.func @_bottleneck_kernel(%arg0: i32, %arg1: memref<4x8x32xbf16, #tpu.memory_space<vmem>>, %arg2: memref<32x72xbf16, #tpu.memory_space<vmem>>, %arg3: memref<1x8xf32, #tpu.memory_space<vmem>>, %arg4: memref<1x64xf32, #tpu.memory_space<vmem>>, %arg5: memref<8x64xbf16, #tpu.memory_space<vmem>>, %arg6: memref<4x1x32xf32, #tpu.memory_space<vmem>>, %arg7: memref<4x1x96xf32, #tpu.memory_space<vmem>>) attributes {dimension_semantics = [#tpu.dimension_semantics<parallel>], iteration_bounds = array<i64: 2>, scalar_prefetch = 0 : i64, scratch_operands = 0 : i64, tpu.core_type = #tpu.core_type<tc>, window_params = [{transform_indices = @transform_0, window_bounds = array<i64: 4, 8, 32>}, {pipeline_mode = #tpu.pipeline_mode<synchronous>, transform_indices = @transform_1, window_bounds = array<i64: 32, 72>}, {pipeline_mode = #tpu.pipeline_mode<synchronous>, transform_indices = @transform_2, window_bounds = array<i64: 1, 8>}, {pipeline_mode = #tpu.pipeline_mode<synchronous>, transform_indices = @transform_3, window_bounds = array<i64: 1, 64>}, {pipeline_mode = #tpu.pipeline_mode<synchronous>, transform_indices = @transform_4, window_bounds = array<i64: 8, 64>}, {transform_indices = @transform_5, window_bounds = array<i64: 4, 1, 32>}, {transform_indices = @transform_6, window_bounds = array<i64: 4, 1, 96>}]} {
    %c0 = arith.constant 0 : index
    %c0_0 = arith.constant 0 : index
    %c0_1 = arith.constant 0 : index
    %0 = vector.load %arg1[%c0, %c0_0, %c0_1] : memref<4x8x32xbf16, #tpu.memory_space<vmem>>, vector<4x8x32xbf16>
    %1 = vector.shape_cast %0 : vector<4x8x32xbf16> to vector<32x32xbf16>
    %c0_2 = arith.constant 0 : index
    %c0_3 = arith.constant 0 : index
    %2 = vector.load %arg2[%c0_2, %c0_3] : memref<32x72xbf16, #tpu.memory_space<vmem>>, vector<32x72xbf16>
    %cst = arith.constant dense<0.000000e+00> : vector<32x72xf32>
    %3 = tpu.matmul %1, %2, %cst {dimension_numbers = #tpu.dot_dimension_numbers<[1], [0], [0], [1], [0, 0, 1, 1], [], []>} : vector<32x32xbf16>, vector<32x72xbf16>, vector<32x72xf32> -> vector<32x72xf32>
    %4 = vector.extract_strided_slice %3 {offsets = [0, 0], sizes = [32, 64], strides = [1, 1]} : vector<32x72xf32> to vector<32x64xf32>
    %5 = vector.extract_strided_slice %3 {offsets = [0, 64], sizes = [32, 8], strides = [1, 1]} : vector<32x72xf32> to vector<32x8xf32>
    %c0_4 = arith.constant 0 : index
    %c0_5 = arith.constant 0 : index
    %6 = vector.load %arg3[%c0_4, %c0_5] : memref<1x8xf32, #tpu.memory_space<vmem>>, vector<1x8xf32>
    %7 = vector.broadcast %6 : vector<1x8xf32> to vector<32x8xf32>
    %8 = arith.addf %5, %7 : vector<32x8xf32>
    %9 = vector.shape_cast %8 : vector<32x8xf32> to vector<4x8x8xf32>
    %cst_6 = arith.constant dense<0xFF800000> : vector<4x8xf32>
    %10 = vector.multi_reduction <maximumf>, %9, %cst_6 [1] : vector<4x8x8xf32> to vector<4x8xf32>
    %11 = vector.shape_cast %10 : vector<4x8xf32> to vector<4x1x8xf32>
    %12 = vector.broadcast %11 : vector<4x1x8xf32> to vector<4x8x8xf32>
    %13 = arith.subf %9, %12 : vector<4x8x8xf32>
    %14 = math.exp %13 : vector<4x8x8xf32>
    %cst_7 = arith.constant dense<0.000000e+00> : vector<4x8xf32>
    %15 = vector.multi_reduction <add>, %14, %cst_7 [1] : vector<4x8x8xf32> to vector<4x8xf32>
    %16 = vector.shape_cast %15 : vector<4x8xf32> to vector<4x1x8xf32>
    %cst_8 = arith.constant 1.000000e+00 : f32
    %17 = vector.broadcast %cst_8 : f32 to vector<4x1x8xf32>
    %18 = arith.divf %17, %16 : vector<4x1x8xf32>
    %19 = vector.broadcast %18 : vector<4x1x8xf32> to vector<4x8x8xf32>
    %20 = arith.mulf %14, %19 : vector<4x8x8xf32>
    %21 = arith.truncf %20 : vector<4x8x8xf32> to vector<4x8x8xbf16>
    %22 = vector.shape_cast %21 : vector<4x8x8xbf16> to vector<32x8xbf16>
    %c0_9 = arith.constant 0 : index
    %c0_10 = arith.constant 0 : index
    %23 = vector.load %arg5[%c0_9, %c0_10] : memref<8x64xbf16, #tpu.memory_space<vmem>>, vector<8x64xbf16>
    %cst_11 = arith.constant dense<0.000000e+00> : vector<32x64xf32>
    %24 = tpu.matmul %22, %23, %cst_11 {dimension_numbers = #tpu.dot_dimension_numbers<[1], [0], [0], [1], [0, 0, 1, 1], [], []>} : vector<32x8xbf16>, vector<8x64xbf16>, vector<32x64xf32> -> vector<32x64xf32>
    %25 = arith.mulf %24, %4 : vector<32x64xf32>
    %26 = vector.shape_cast %25 : vector<32x64xf32> to vector<4x8x64xf32>
    %cst_12 = arith.constant dense<0.000000e+00> : vector<4x64xf32>
    %27 = vector.multi_reduction <add>, %26, %cst_12 [1] : vector<4x8x64xf32> to vector<4x64xf32>
    %c0_13 = arith.constant 0 : index
    %c0_14 = arith.constant 0 : index
    %28 = vector.load %arg4[%c0_13, %c0_14] : memref<1x64xf32, #tpu.memory_space<vmem>>, vector<1x64xf32>
    %29 = vector.broadcast %28 : vector<1x64xf32> to vector<4x64xf32>
    %30 = arith.addf %27, %29 : vector<4x64xf32>
    %31 = vector.extract_strided_slice %30 {offsets = [0, 0], sizes = [4, 32], strides = [1, 1]} : vector<4x64xf32> to vector<4x32xf32>
    %32 = vector.extract_strided_slice %30 {offsets = [0, 32], sizes = [4, 32], strides = [1, 1]} : vector<4x64xf32> to vector<4x32xf32>
    %c0_15 = arith.constant 0 : index
    %c0_16 = arith.constant 0 : index
    %c0_17 = arith.constant 0 : index
    %33 = vector.load %arg6[%c0_15, %c0_16, %c0_17] : memref<4x1x32xf32, #tpu.memory_space<vmem>>, vector<4x1x32xf32>
    %34 = vector.shape_cast %33 : vector<4x1x32xf32> to vector<4x32xf32>
    %cst_18 = arith.constant 5.000000e-01 : f32
    %35 = vector.broadcast %cst_18 : f32 to vector<4x32xf32>
    %36 = arith.mulf %35, %32 : vector<4x32xf32>
    %37 = math.exp %36 : vector<4x32xf32>
    %38 = arith.mulf %37, %37 : vector<4x32xf32>
    %39 = arith.mulf %34, %37 : vector<4x32xf32>
    %cst_19 = arith.constant 1.000000e+00 : f32
    %40 = vector.broadcast %cst_19 : f32 to vector<4x32xf32>
    %41 = arith.mulf %39, %40 : vector<4x32xf32>
    %42 = arith.addf %31, %41 : vector<4x32xf32>
    %cst_20 = arith.constant 1.000000e+00 : f32
    %43 = vector.broadcast %cst_20 : f32 to vector<4x32xf32>
    %44 = arith.addf %43, %32 : vector<4x32xf32>
    %45 = arith.mulf %31, %31 : vector<4x32xf32>
    %46 = arith.subf %44, %45 : vector<4x32xf32>
    %47 = arith.subf %46, %38 : vector<4x32xf32>
    %cst_21 = arith.constant dense<0.000000e+00> : vector<4xf32>
    %48 = vector.multi_reduction <add>, %47, %cst_21 [1] : vector<4x32xf32> to vector<4xf32>
    %49 = vector.shape_cast %48 : vector<4xf32> to vector<4x1xf32>
    %cst_22 = arith.constant -5.000000e-01 : f32
    %50 = vector.broadcast %cst_22 : f32 to vector<4x1xf32>
    %51 = arith.mulf %50, %49 : vector<4x1xf32>
    %52 = vector.shape_cast %51 : vector<4x1xf32> to vector<4x1xf32>
    %53 = vector.broadcast %52 : vector<4x1xf32> to vector<4x32xf32>
    %54 = tpu.concatenate %42, %31, %53 in 1 : vector<4x32xf32>, vector<4x32xf32>, vector<4x32xf32> -> vector<4x96xf32>
    %55 = vector.shape_cast %54 : vector<4x96xf32> to vector<4x1x96xf32>
    %c0_23 = arith.constant 0 : index
    %c0_24 = arith.constant 0 : index
    %c0_25 = arith.constant 0 : index
    %56 = vector.load %arg7[%c0_23, %c0_24, %c0_25] : memref<4x1x96xf32, #tpu.memory_space<vmem>>, vector<4x1x96xf32>
    tpu.vector_store %arg7[%c0_23, %c0_24, %c0_25], %55 {strides = array<i32>} : memref<4x1x96xf32, #tpu.memory_space<vmem>>, vector<4x1x96xf32>,
    return
  }
  func.func @transform_0(%arg0: i32) -> (i32, i32, i32) {
    %c0_i32 = arith.constant 0 : i32
    %c0_i32_0 = arith.constant 0 : i32
    %c0_i32_1 = arith.constant 0 : i32
    return %arg0, %c0_i32, %c0_i32_0 : i32, i32, i32
  }
  func.func @transform_1(%arg0: i32) -> (i32, i32) {
    %c0_i32 = arith.constant 0 : i32
    %c0_i32_0 = arith.constant 0 : i32
    %c0_i32_1 = arith.constant 0 : i32
    return %c0_i32, %c0_i32_0 : i32, i32
  }
  func.func @transform_2(%arg0: i32) -> (i32, i32) {
    %c0_i32 = arith.constant 0 : i32
    %c0_i32_0 = arith.constant 0 : i32
    %c0_i32_1 = arith.constant 0 : i32
    return %c0_i32, %c0_i32_0 : i32, i32
  }
  func.func @transform_3(%arg0: i32) -> (i32, i32) {
    %c0_i32 = arith.constant 0 : i32
    %c0_i32_0 = arith.constant 0 : i32
    %c0_i32_1 = arith.constant 0 : i32
    return %c0_i32, %c0_i32_0 : i32, i32
  }
  func.func @transform_4(%arg0: i32) -> (i32, i32) {
    %c0_i32 = arith.constant 0 : i32
    %c0_i32_0 = arith.constant 0 : i32
    %c0_i32_1 = arith.constant 0 : i32
    return %c0_i32, %c0_i32_0 : i32, i32
  }
  func.func @transform_5(%arg0: i32) -> (i32, i32, i32) {
    %c0_i32 = arith.constant 0 : i32
    %c0_i32_0 = arith.constant 0 : i32
    %c0_i32_1 = arith.constant 0 : i32
    return %arg0, %c0_i32, %c0_i32_0 : i32, i32, i32
  }
  func.func @transform_6(%arg0: i32) -> (i32, i32, i32) {
    %c0_i32 = arith.constant 0 : i32
    %c0_i32_0 = arith.constant 0 : i32
    %c0_i32_1 = arith.constant 0 : i32
    return %arg0, %c0_i32, %c0_i32_0 : i32, i32, i32
  }
}

</mosaic_0001>

<bundles_post_ra>
// kernel: tpu_custom_call.1
= control target key start
LH: loop header
LB: loop body
LE: loop exit
PB: predicated region body
PF: predicated region fallthrough
CT: control target
= control target key end

     0   :  { %s1594_s0 = inlined_call_operand.hbm [shape: bf16[8,8,32], index: 0, kind: input, shape index: {}]   ;;  %s1595_s1 = inlined_call_operand.hbm [shape: bf16[32,72], index: 1, kind: input, shape index: {}]   ;;  %s1596_s2 = inlined_call_operand.vmem [shape: f32[1,8], index: 2, kind: input, shape index: {}]   ;;  %s1597_s3 = inlined_call_operand.vmem [shape: f32[1,64], index: 3, kind: input, shape index: {}]   ;;  %s1598_s4 = inlined_call_operand.hbm [shape: bf16[8,64], index: 4, kind: input, shape index: {}]   ;;  %s1599_s5 = inlined_call_operand.hbm [shape: f32[8,1,32], index: 5, kind: input, shape index: {}]   ;;  %s1600_s6 = inlined_call_operand.hbm [shape: f32[8,1,96], index: 6, kind: output, shape index: {}]  }
   0x1   :  { %1606 = sst [smem:[#allocation18_spill]] %s1595_s1 }
   0x2   :  { %1607 = sst [smem:[#allocation19_spill]] %s1598_s4 }
   0x3   :  { %11 = vsyncpa [#allocation3], 0 }
   0x4   :  { %13 = vsyncpa [#allocation3 + $0x1], 0 }
   0x5   :  { %14 = vsyncpa [#allocation6], 0 }
   0x6   :  { %15 = vsyncpa [#allocation9], 0 }
   0x7   :  { %17 = vsyncpa [#allocation9 + $0x1], 0 }
   0x8   :  { %18 = vsyncpa [#allocation4], 0 }
   0x9   :  { %20 = vsyncpa [#allocation4 + $0x1], 0  ;;  %s1299_s21 = smov 0   ;;  %s1301_s22 = smov 0  }
   0xa   :  { %s1303_s23 = smov 0   ;;  %s1305_s24 = smov 0  }
   0xb LB: > { %1608 = sst [smem:[#allocation15_spill]] %s1247_s23  ;;  %s1320_s25 = sadd.s32 4294967295, %s1251_s24   ;;  %s1251_s24 = sphi %s1305_s24, %s1621_s24   ;;  %s1247_s23 = sphi %s1303_s23, %s1623_s23   ;;  %s1243_s22 = sphi %s1301_s22, %s1625_s22   ;;  %s1239_s21 = sphi %s1299_s21, %s1624_s21  }
   0xc   : > { %s902_s26 = sadd.s32 4294967294, %s1251_s24   ;;  %p46_p0 = scmp.ne.s32.totalorder %s1243_s22, %s1239_s21 }
   0xd   : > { %p47_p1 = scmp.eq.s32.totalorder %s1320_s25, 0  ;;  %p180_p2 = scmp.eq.s32.totalorder %s1320_s25, 1 }
   0xe   : > { %p186_p3 = scmp.eq.s32.totalorder %s902_s26, 1  ;;  %p903_p5 = scmp.ge.s32.totalorder %s1251_s24, 1 }
   0xf   : > { %p1329_p4 = por %p47_p1, %p46_p0  ;;  %p193_p7 = scmp.lt.s32.totalorder %s1251_s24, 3 }
  0x10   : > { %p1334_p6 = por %p186_p3, %p46_p0  ;;  %s1611_s1 = sld [smem:[#allocation18_spill]] }
  0x11   : > { %p1342_p8 = pnand %p903_p5, %p193_p7  ;;  %s1253_s9 = smov [#allocation5]  }
  0x12   : > { %s206_s10 = sshll.u32 %s1253_s9, 4  ;;  %s1613_s4 = sld [smem:[#allocation19_spill]]  ;;  %s207_s10 = int_to_ptr.vmem [resolvable:$true] %s206_s10 }
  0x13   : > { %p964_p9 = pneg %p1342_p8  ;;  %s1601_s14 = smov 64  }
  0x14   : > { %s1602_s15 = smov 4   ;;  %s1256_s16 = smov [#allocation7]  }
  0x15   : > { %p965_p10 = pnand %p964_p9, %p47_p1  ;;  %s227_s17 = sshll.u32 %s1256_s16, 4  ;;  %s228_s17 = int_to_ptr.vmem [resolvable:$true] %s227_s17 }
  0x16   : > { %s204_s7 = sshll.u32 %s1611_s1, 4  ;;  %s1358_s18 = sadd.s32 1, %s1251_s24   ;;  %s205_s7 = int_to_ptr.hbm [resolvable:$true] %s204_s7 }
  0x17   : > { %967 = dma.hbm_to_vmem [thread:$0]  (!%p965_p10), %s205_s7, 256, %s207_s10, [#allocation6], %s1601_s14, %s1601_s14, %s1602_s15  }
  0x18   : > { %s225_s13 = sshll.u32 %s1613_s4, 4  ;;  %1614 = sst [smem:[#allocation16_spill]] %s1358_s18  ;;  %s226_s13 = int_to_ptr.hbm [resolvable:$true] %s225_s13 }
  0x19   : > { %970 = dma.hbm_to_vmem [thread:$0]  (!%p965_p10), %s226_s13, 64, %s228_s17, [#allocation6]  }
  0x1a   : > { %s33_s19 = sadd.s32 1, %s1247_s23  ;;  %s30_s20 = ssub.s32 %s1251_s24, %s1358_s18 }
  0x1b   : > { %p40_p12 = scmp.ne.s32.totalorder %s1247_s23, %s1243_s22  ;;  %p31_p13 = scmp.eq.s32.totalorder %s30_s20, 0 }
  0x1c   : > { %p41_p0 = scmp.eq.s32.totalorder %s1251_s24, 0  ;;  %p984_p5 = scmp.lt.s32.totalorder %s1251_s24, 2 }
  0x1d   : > { %p1368_p3 = por %p180_p2, %p40_p12  ;;  %s1377_s30 = sand.u32 1, %s1247_s23  }
  0x1e   : > { %s1374_s29 = scalar_select %p31_p13, %s1247_s23, %s33_s19  }
  0x1f   : > { %p42_p7 = por %p41_p0, %p40_p12  ;;  %s907_s7 = sshll.u32 %s1377_s30, 4 }
  0x20   : > { %1616 = sst [smem:[#allocation17_spill]] %s1374_s29  ;;  %s942_s9 = sshll.u32 %s1251_s24, 4 }
  0x21   : > { %s247_s12 = scalar_lea.hbm %s1594_s0, %s942_s9  ;;  %s242_s13 = scalar_lea.vmem [#allocation2], %s907_s7 }
  0x22   : > { %s250_s16 = sshll.u32 %s242_s13, 4  ;;  %s248_s17 = sshll.u32 %s247_s12, 4  ;;  %s251_s16 = int_to_ptr.vmem [resolvable:$true] %s250_s16  ;;  %s249_s17 = int_to_ptr.hbm [resolvable:$true] %s248_s17 }
  0x23   : > { %p1384_p2 = pnand %p984_p5, %p42_p7  ;;  %s910_s20 = sshll.u32 %s1377_s30, 2 }
  0x24   : > { %s239_s14 = scalar_lea.sflag [#allocation3], %s1377_s30  ;;  %s1117_s15 = sshra.s32 %s249_s17, 4  ;;  %s1118_s15 = int_to_ptr.hbm [resolvable:$true] %s1117_s15 }
  0x25   : > { %s1119_s1 = scalar_lea.hbm %s1118_s15, 16  ;;  %p1121_p10 = pneg %p1384_p2 }
  0x26   : > { %p1120_p9 = scmp.ne.s32.totalorder %s1118_s15, %s1119_s1  ;;  %s1124_s10 = scalar_lea.hbm %s1594_s0, 32 }
  0x27   : > { %p1125_p0 = scmp.lt.s32.totalorder %s1118_s15, %s1594_s0  ;;  %p1126_p5 = scmp.lt.s32.totalorder %s1124_s10, %s1119_s1 }
  0x28   : > { %p1122_p12 = pnand %p1121_p10, %p1120_p9 }
  0x29   : > { %p1127_p7 = por %p1126_p5, %p1125_p0 }
  0x2a   : > { %p1123_p13 = pneg %p1122_p12 }
  0x2c   : > { %p1128_p11 = pnand %p1127_p7, %p1123_p13 }
  0x2e   : > { %1131 = shalt.err (!%p1128_p11)
}
  0x2f   : > { %s1618_s13 = smov 4   ;;  %s1619_s4 = smov 64  }
  0x30   : > { %974 = dma.hbm_to_vmem [thread:$0]  (!%p1384_p2), %s249_s17, 256, %s251_s16, %s239_s14, %s1619_s4, %s1619_s4, %s1618_s13  }
  0x31   : > { %s911_s29 = sshll.u32 %s1251_s24, 2  ;;  %s264_s7 = scalar_lea.vmem [#allocation8], %s910_s20 }
  0x32   : > { %s271_s9 = sshll.u32 %s264_s7, 4  ;;  %s268_s15 = scalar_lea.hbm %s1599_s5, %s911_s29  ;;  %s272_s9 = int_to_ptr.vmem [resolvable:$true] %s271_s9 }
  0x33   : > { %s269_s1 = sshll.u32 %s268_s15, 4  ;;  %s261_s10 = scalar_lea.sflag [#allocation9], %s1377_s30  ;;  %s270_s1 = int_to_ptr.hbm [resolvable:$true] %s269_s1 }
  0x34   : > { %s1147_s11 = sshra.s32 %s270_s1, 4  ;;  %s1154_s16 = scalar_lea.hbm %s1599_s5, 8  ;;  %s1148_s11 = int_to_ptr.hbm [resolvable:$true] %s1147_s11 }
  0x35   : > { %s1149_s12 = scalar_lea.hbm %s1148_s11, 4  ;;  %p1155_p13 = scmp.lt.s32.totalorder %s1148_s11, %s1599_s5 }
  0x36   : > { %p1150_p11 = scmp.ne.s32.totalorder %s1148_s11, %s1149_s12  ;;  %p1156_p0 = scmp.lt.s32.totalorder %s1154_s16, %s1149_s12 }
  0x38   : > { %p1152_p9 = pnand %p1150_p11, %p1121_p10  ;;  %p1157_p5 = por %p1156_p0, %p1155_p13 }
  0x3a   : > { %p1153_p12 = pneg %p1152_p9 }
  0x3c   : > { %p1158_p7 = pnand %p1157_p5, %p1153_p12 }
  0x3e   : > { %1161 = shalt.err (!%p1158_p7)
}
  0x3f   : > { %s1257_s23 = smov 16   ;;  %s1258_s18 = smov 1  }
  0x40   : > { %977 = dma.hbm_to_vmem [thread:$0]  (!%p1384_p2), %s270_s1, 64, %s272_s9, %s261_s10, %s1257_s23, %s1257_s23, %s1258_s18  }
  0x41   : > { %283 = sbr.rel (%p1342_p8) target bundleno = 927 (0x39f), region = 44  ;;  %s1425_s29 = sand.u32 (!%p1342_p8), 1, %s1243_s22  }
  0x42   : > { %s913_s30 = sshll.u32 (!%p1342_p8), %s1425_s29, 4  ;;  %s286_s13 = scalar_lea.sflag (!%p1342_p8), [#allocation3], %s1425_s29 }
  0x43   : > { %s289_s7 = scalar_lea.vmem (!%p1342_p8), [#allocation2], %s913_s30 }
  0x46   : > { %1222 = dma.done.wait (%p1329_p4), %s286_s13, 256  }
  0x47   : > { %1224 = vsyncadd (%p1329_p4), %s286_s13, 4294967040 }
  0x48   : > { %1226 = dma.done.wait (%p47_p1), [#allocation6], 320  }
  0x49   : > { %1228 = vsyncadd (%p47_p1), [#allocation6], 4294966976  ;;  %s916_s8 = sshll.u32 %s1425_s29, 2  ;;  %s306_s19 = scalar_lea.sflag [#allocation9], %s1425_s29 }
  0x4a   : > { %s1441_s9 = scalar_lea.vmem [#allocation8], %s916_s8 }
  0x4b   : > { %1230 = dma.done.wait (%p1329_p4), %s306_s19, 64  }
  0x4c   : > { %1232 = vsyncadd (%p1329_p4), %s306_s19, 4294967232  ;;  %v946_v0 = vld [vmem:[#allocation5 + $0x8] sm:$0xff]  ;;  %v1031_v1 = vld [vmem:[%s1596_s2] ss:$0 sm:$0xff]  ;;  %s1259_s10 = smov 64   ;;  %vm378_vm0 = vcmask 261120  }
  0x4d   : > { %391 = vmatpush.bf16.msra.mxu0 %v946_v0  ;;  %947 = vmatpush.bf16.msra.mxu2 %v946_v0  ;;  %v945_v2 = vld [vmem:[#allocation5] sm:$0xff]  ;;  %v944_v4 = vld [vmem:[%s289_s7 + $0x8] sm:$0xff]  ;;  %vm414_vm1 = vcmask 589312   ;;  %vm573_vm2 = vcmask 1043456   ;;  %s1260_s12 = smov 32   ;;  %s1261_s4 = smov 96  }
  0x4e   : > { %407 = vrot.lane.b32.xlu0 %v1031_v1, %s1259_s10  ;;  %v943_v3 = vld [vmem:[%s289_s7] sm:$0xff]  ;;  %s939_s14 = sshll.u32 %s1320_s25, 2  ;;  %s343_s23 = scalar_lea.vmem [#allocation10], %s916_s8 }
  0x4f   : > { %s783_s20 = scalar_lea.hbm %s1600_s6, %s939_s14  ;;  %s784_s18 = sshll.u32 %s343_s23, 4  ;;  %s785_s18 = int_to_ptr.vmem [resolvable:$true] %s784_s18 }
  0x50   : > { %s786_s30 = sshll.u32 %s783_s20, 4  ;;  %s773_s25 = scalar_lea.sflag [#allocation4], %s1425_s29  ;;  %s787_s30 = int_to_ptr.hbm [resolvable:$true] %s786_s30 }
  0x51   : > { %392 = vmatpush.bf16.msra.mxu0 %v945_v2  ;;  %948 = vmatpush.bf16.msra.mxu2 %v945_v2  ;;  %s1191_s13 = sshra.s32 %s787_s30, 4  ;;  %s1192_s13 = int_to_ptr.hbm [resolvable:$true] %s1191_s13 }
  0x52   : > { %s1193_s7 = scalar_lea.hbm %s1192_s13, 4  ;;  %p1198_p2 = scmp.lt.s32.totalorder %s1192_s13, %s1600_s6 }
  0x53   : > { %p1194_p1 = scmp.ne.s32.totalorder %s1192_s13, %s1193_s7 }
  0x54   : > { %934 = vmatmul.msk.bf16.vlgmr.msra.gmra.mxu0 %vm378_vm0, %v943_v3  ;;  %935 = vmatmul.msk.bf16.vlgmr.msra.gmra.mxu2 %vm378_vm0, %v944_v4 }
  0x55   : > { %p1195_p4 = pnand %p1194_p1, %p1368_p3 }
  0x57   : > { %p1196_p8 = pneg %p1195_p4 }
  0xc0   : > { %v408_v5 = vpop.permute.xlu0 %407 }
  0xd1   : > { %v1453_v6 = vpop.f32.mrf.mxu0 }
  0xd2   : > { %v410_v7 = vadd.f32 %v408_v5, %v1453_v6 }
  0xd4   : > { %v415_v8 = vsel %vm414_vm1, %v410_v7, -inf }
  0xd5   : > { %v416_v9 = vrot.slane %v415_v8, 4 }
  0xd7   : > { %v417_v10 = vmax.f32 %v415_v8, %v416_v9  ;;  %v1457_v11 = vpop.f32.mrf.mxu2 }
  0xd8   : > { %v412_v12 = vadd.f32 %v408_v5, %v1457_v11 }
  0xd9   : > { %v418_v13 = vrot.slane %v417_v10, 2  ;;  %v1460_v14 = vpop.f32.mrf.mxu0 }
  0xda   : > { %v429_v15 = vsel %vm414_vm1, %v412_v12, -inf  ;;  %v411_v16 = vadd.f32 %v408_v5, %v1460_v14 }
  0xdb   : > { %v419_v17 = vmax.f32 %v417_v10, %v418_v13  ;;  %v430_v18 = vrot.slane %v429_v15, 4 }
  0xdc   : > { %v422_v19 = vsel %vm414_vm1, %v411_v16, -inf }
  0xdd   : > { %v420_v20 = vrot.slane %v419_v17, 1  ;;  %v431_v21 = vmax.f32 %v429_v15, %v430_v18  ;;  %v423_v22 = vrot.slane %v422_v19, 4 }
  0xdf   : > { %v421_v23 = vmax.f32 %v419_v17, %v420_v20  ;;  %v432_v24 = vrot.slane %v431_v21, 2  ;;  %v424_v25 = vmax.f32 %v422_v19, %v423_v22  ;;  %v1465_v26 = vpop.f32.mrf.mxu2 }
  0xe0   : > { %v413_v27 = vadd.f32 %v408_v5, %v1465_v26 }
  0xe1   : > { %v443_v28 = vsub.f32 %v410_v7, %v421_v23  ;;  %v433_v29 = vmax.f32 %v431_v21, %v432_v24  ;;  %v425_v30 = vrot.slane %v424_v25, 2  ;;  %v551_v21 = vld [vmem:[#allocation7] sm:$0xf] }
  0xe2   : > { %v436_v31 = vsel %vm414_vm1, %v413_v27, -inf }
  0xe3   : > { %v447_v32 = vmul.f32 1.442695, %v443_v28  ;;  %v434_v33 = vrot.slane %v433_v29, 1  ;;  %v426_v34 = vmax.f32 %v424_v25, %v425_v30  ;;  %v437_v35 = vrot.slane %v436_v31, 4 }
  0xe4   : > { %v575_v25 = vsel %vm573_vm2, %v551_v21, 0 }
  0xe5   : > { %1033 = vpow2.f32 %v447_v32  ;;  %v435_v36 = vmax.f32 %v433_v29, %v434_v33  ;;  %v427_v37 = vrot.slane %v426_v34, 1  ;;  %v438_v38 = vmax.f32 %v436_v31, %v437_v35  ;;  %584 = vmatpush.bf16.msra.mxu1 %v575_v25  ;;  %949 = vmatpush.bf16.msra.mxu3 %v575_v25 }
  0xe7   : > { %v445_v39 = vsub.f32 %v412_v12, %v435_v36  ;;  %v428_v40 = vmax.f32 %v426_v34, %v427_v37  ;;  %v439_v41 = vrot.slane %v438_v38, 2 }
  0xe9   : > { %v451_v42 = vmul.f32 1.442695, %v445_v39  ;;  %v444_v43 = vsub.f32 %v411_v16, %v428_v40  ;;  %v440_v44 = vmax.f32 %v438_v38, %v439_v41 }
  0xeb   : > { %v1469_v45 = vpop.eup %1033  ;;  %1035 = vpow2.f32 %v451_v42  ;;  %v449_v46 = vmul.f32 1.442695, %v444_v43  ;;  %v441_v47 = vrot.slane %v440_v44, 1 }
  0xec   : > { %v455_v48 = vsel %vm414_vm1, %v1469_v45, 0.0 }
  0xed   : > { %v456_v49 = vrot.slane %v455_v48, 4  ;;  %1037 = vpow2.f32 %v449_v46  ;;  %v442_v50 = vmax.f32 %v440_v44, %v441_v47 }
  0xef   : > { %v457_v51 = vadd.f32 %v456_v49, %v455_v48  ;;  %v446_v52 = vsub.f32 %v413_v27, %v442_v50 }
  0xf1   : > { %v1473_v53 = vpop.eup %1035  ;;  %v458_v54 = vrot.slane %v457_v51, 2  ;;  %v453_v55 = vmul.f32 1.442695, %v446_v52 }
  0xf2   : > { %v469_v56 = vsel %vm414_vm1, %v1473_v53, 0.0 }
  0xf3   : > { %v1477_v57 = vpop.eup %1037  ;;  %v459_v58 = vadd.f32 %v458_v54, %v457_v51  ;;  %v470_v59 = vrot.slane %v469_v56, 4  ;;  %1039 = vpow2.f32 %v453_v55 }
  0xf4   : > { %v462_v60 = vsel %vm414_vm1, %v1477_v57, 0.0 }
  0xf5   : > { %v460_v61 = vrot.slane %v459_v58, 1  ;;  %v471_v62 = vadd.f32 %v470_v59, %v469_v56  ;;  %v463_v63 = vrot.slane %v462_v60, 4 }
  0xf7   : > { %v461_v0 = vadd.f32 %v460_v61, %v459_v58  ;;  %v472_v1 = vrot.slane %v471_v62, 2  ;;  %v464_v2 = vadd.f32 %v463_v63, %v462_v60 }
  0xf9   : > { %v1481_v3 = vpop.eup %1039  ;;  %1041 = vrcp.f32 %v461_v0  ;;  %v473_v4 = vadd.f32 %v472_v1, %v471_v62  ;;  %v465_v5 = vrot.slane %v464_v2, 2  ;;  %v492_v29 = vand.u32 2147483647, %v461_v0 }
  0xfa   : > { %v476_v7 = vsel %vm414_vm1, %v1481_v3, 0.0  ;;  %v494_v30 = vand.u32 2147483648, %v461_v0  ;;  %vm488_vm4 = vweird.f32 %v461_v0 }
  0xfb   : > { %v474_v8 = vrot.slane %v473_v4, 1  ;;  %v466_v9 = vadd.f32 %v465_v5, %v464_v2  ;;  %v477_v10 = vrot.slane %v476_v7, 4  ;;  %vm493_vm6 = vcmp.eq.f32.partialorder %v492_v29, 8.507059e+37 }
  0xfc   : > { %v495_v37 = vor.u32 1.1754944e-38, %v494_v30 }
  0xfd   : > { %v475_v12 = vadd.f32 %v474_v8, %v473_v4  ;;  %v467_v13 = vrot.slane %v466_v9, 1  ;;  %v478_v15 = vadd.f32 %v477_v10, %v476_v7 }
  0xff   : > { %v1042_v16 = vpop.eup %1041  ;;  %1043 = vrcp.f32 %v475_v12  ;;  %v468_v17 = vadd.f32 %v467_v13, %v466_v9  ;;  %v479_v18 = vrot.slane %v478_v15, 2  ;;  %vm518_vm7 = vweird.f32 %v475_v12 }
 0x100   : > { %v484_v19 = vmul.f32 %v1042_v16, %v461_v0  ;;  %vm489_vm3 = vweird.f32 %v1042_v16  ;;  %v522_v42 = vand.u32 2147483647, %v475_v12  ;;  %v524_v43 = vand.u32 2147483648, %v475_v12 }
 0x101   : > { %1045 = vrcp.f32 %v468_v17  ;;  %v480_v20 = vadd.f32 %v479_v18, %v478_v15  ;;  %vm490_vm5 = vmor %vm488_vm4, %vm489_vm3  ;;  %v509_v41 = vand.u32 2147483648, %v468_v17  ;;  %v507_v46 = vand.u32 2147483647, %v468_v17 }
 0x102   : > { %v485_v22 = vsub.f32 1.0, %v484_v19  ;;  %vm503_vm10 = vweird.f32 %v468_v17  ;;  %v525_v55 = vor.u32 1.1754944e-38, %v524_v43  ;;  %vm523_vm14 = vcmp.eq.f32.partialorder %v522_v42, 8.507059e+37 }
 0x103   : > { %v481_v23 = vrot.slane %v480_v20, 1  ;;  %v510_v54 = vor.u32 1.1754944e-38, %v509_v41  ;;  %vm508_vm13 = vcmp.eq.f32.partialorder %v507_v46, 8.507059e+37  ;;  %vm566_vm4 = vcmask 64512   ;;  %v1032_v41 = vld [vmem:[%s1597_s3] ss:$0 sm:$0xff] }
 0x104   : > { %v486_v24 = vmul.f32 %v1042_v16, %v485_v22 }
 0x105   : > { %v1044_v27 = vpop.eup %1043  ;;  %v482_v28 = vadd.f32 %v481_v23, %v480_v20 }
 0x106   : > { %v487_v31 = vadd.f32 %v1042_v16, %v486_v24  ;;  %v514_v32 = vmul.f32 %v1044_v27, %v475_v12  ;;  %vm519_vm8 = vweird.f32 %v1044_v27 }
 0x107   : > { %v1046_v33 = vpop.eup %1045  ;;  %1047 = vrcp.f32 %v482_v28  ;;  %vm520_vm11 = vmor %vm518_vm7, %vm519_vm8  ;;  %v537_v61 = vand.u32 2147483647, %v482_v28  ;;  %v539_v62 = vand.u32 2147483648, %v482_v28  ;;  %vm533_vm1 = vweird.f32 %v482_v28 }
 0x108   : > { %v491_v34 = vsel %vm490_vm5, %v1042_v16, %v487_v31  ;;  %v499_v35 = vmul.f32 %v1046_v33, %v468_v17  ;;  %v515_v36 = vsub.f32 1.0, %v514_v32  ;;  %vm504_vm9 = vweird.f32 %v1046_v33 }
 0x109   : > { %v496_v40 = vsel %vm493_vm6, %v495_v37, %v491_v34  ;;  %vm505_vm12 = vmor %vm503_vm10, %vm504_vm9  ;;  %v540_v5 = vor.u32 1.1754944e-38, %v539_v62  ;;  %vm538_vm3 = vcmp.eq.f32.partialorder %v537_v61, 8.507059e+37  ;;  %vm600_vm5 = vcmask 523264  }
 0x10a   : > { %v500_v38 = vsub.f32 1.0, %v499_v35  ;;  %v516_v39 = vmul.f32 %v1044_v27, %v515_v36  ;;  %v543_v50 = vmul.f32 %v1469_v45, %v496_v40  ;;  %vm718_vm6 = vcmask 1041409  }
 0x10b   : > { %vm721_vm7 = vcmask 1042434   ;;  %vm724_vm8 = vcmask 1043459   ;;  %vm729_vm9 = vcmask 257024   ;;  %vm767_vm10 = vcmask 778240  }
 0x10c   : > { %v501_v44 = vmul.f32 %v1046_v33, %v500_v38  ;;  %v517_v47 = vadd.f32 %v1044_v27, %v516_v39  ;;  %v547_v0 = vpack.c.bf16 %v543_v50, %v543_v50 }
 0x10d   : > { %v1048_v48 = vpop.eup %1047 }
 0x10e   : > { %v502_v49 = vadd.f32 %v1046_v33, %v501_v44  ;;  %v521_v51 = vsel %vm520_vm11, %v1044_v27, %v517_v47  ;;  %v529_v52 = vmul.f32 %v1048_v48, %v482_v28  ;;  %vm534_vm15 = vweird.f32 %v1048_v48 }
 0x10f   : > { %v526_v60 = vsel %vm523_vm14, %v525_v55, %v521_v51  ;;  %vm535_vm2 = vmor %vm533_vm1, %vm534_vm15  ;;  %v556_v7 = vunpack.c.l.b16 %v547_v0 }
 0x110   : > { %v506_v56 = vsel %vm505_vm12, %v1046_v33, %v502_v49  ;;  %v530_v58 = vsub.f32 1.0, %v529_v52  ;;  %v545_v4 = vmul.f32 %v1473_v53, %v526_v60 }
 0x111   : > { %v511_v59 = vsel %vm508_vm13, %v510_v54, %v506_v56 }
 0x112   : > { %v544_v63 = vmul.f32 %v1477_v57, %v511_v59  ;;  %v531_v1 = vmul.f32 %v1048_v48, %v530_v58  ;;  %v549_v15 = vpack.c.bf16 %v545_v4, %v545_v4 }
 0x114   : > { %v548_v2 = vpack.c.bf16 %v544_v63, %v544_v63  ;;  %v532_v45 = vadd.f32 %v1048_v48, %v531_v1  ;;  %v558_v16 = vunpack.c.l.b16 %v549_v15 }
 0x116   : > { %v557_v8 = vunpack.c.l.b16 %v548_v2  ;;  %v536_v9 = vsel %vm535_vm2, %v1048_v48, %v532_v45 }
 0x117   : > { %v541_v10 = vsel %vm538_vm3, %v540_v5, %v536_v9 }
 0x118   : > { %v560_v12 = vpack.c.b16 %v557_v8, %v556_v7  ;;  %v546_v13 = vmul.f32 %v1481_v3, %v541_v10 }
 0x11a   : > { %562 = vrot.lane.b32.xlu1 %v560_v12, %s1259_s10  ;;  %v550_v57 = vpack.c.bf16 %v546_v13, %v546_v13 }
 0x11c   : > { %v559_v17 = vunpack.c.l.b16 %v550_v57 }
 0x11e   : > { %v561_v18 = vpack.c.b16 %v559_v17, %v558_v16 }
 0x120   : > { %564 = vrot.lane.b32.xlu0 %v561_v18, %s1259_s10 }
 0x18c   : > { %v563_v53 = vpop.permute.xlu1 %562 }
 0x18d   : > { %936 = vmatmul.msk.bf16.vlgmr.msra.gmra.mxu1 %vm566_vm4, %v563_v53 }
 0x192   : > { %v565_v19 = vpop.permute.xlu0 %564 }
 0x193   : > { %937 = vmatmul.msk.bf16.vlgmr.msra.gmra.mxu3 %vm566_vm4, %v565_v19 }
 0x20a   : > { %v586_v20 = vpop.f32.mrf.mxu1 }
 0x20b   : > { %v596_v21 = vmul.f32 %v586_v20, %v1453_v6 }
 0x20d   : > { %v601_v3 = vsel %vm600_vm5, %v596_v21, 0.0 }
 0x20e   : > { %v602_v24 = vrot.slane %v601_v3, 4 }
 0x210   : > { %v603_v30 = vadd.f32 %v602_v24, %v601_v3 }
 0x212   : > { %v588_v22 = vpop.f32.mrf.mxu1  ;;  %v604_v6 = vrot.slane %v603_v30, 2 }
 0x213   : > { %v597_v23 = vmul.f32 %v588_v22, %v1460_v14 }
 0x214   : > { %v605_v40 = vadd.f32 %v604_v6, %v603_v30 }
 0x215   : > { %v608_v25 = vsel %vm600_vm5, %v597_v23, 0.0 }
 0x216   : > { %v609_v27 = vrot.slane %v608_v25, 4  ;;  %v591_v28 = vpop.f32.mrf.mxu3  ;;  %v606_v48 = vrot.slane %v605_v40, 1 }
 0x217   : > { %v598_v29 = vmul.f32 %v591_v28, %v1457_v11 }
 0x218   : > { %v610_v31 = vadd.f32 %v609_v27, %v608_v25  ;;  %v607_v54 = vadd.f32 %v606_v48, %v605_v40  ;;  %v637_v48 = vld [vmem:[%s1441_s9] sm:$0x1] }
 0x219   : > { %v615_v32 = vsel %vm600_vm5, %v598_v29, 0.0 }
 0x21a   : > { %v611_v33 = vrot.slane %v610_v31, 2  ;;  %v616_v34 = vrot.slane %v615_v32, 4  ;;  %v1514_v61 = vadd.f32 %v1032_v41, %v607_v54 }
 0x21c   : > { %v612_v35 = vadd.f32 %v611_v33, %v610_v31  ;;  %v617_v36 = vadd.f32 %v616_v34, %v615_v32  ;;  %v685_v45 = vmul.f32 %v1514_v61, %v1514_v61  ;;  %v641_v10 = vmul.f32 0.5, %v1514_v61 }
 0x21d   : > { %v681_v17 = vadd.f32 1.0, %v1514_v61 }
 0x21e   : > { %v613_v37 = vrot.slane %v612_v35, 1  ;;  %v618_v38 = vrot.slane %v617_v36, 2  ;;  %v593_v39 = vpop.f32.mrf.mxu3  ;;  %v645_v13 = vmul.f32 1.442695, %v641_v10 }
 0x21f   : > { %v599_v14 = vmul.f32 %v593_v39, %v1465_v26 }
 0x220   : > { %v614_v11 = vadd.f32 %v613_v37, %v612_v35  ;;  %v619_v42 = vadd.f32 %v618_v38, %v617_v36 }
 0x221   : > { %v622_v43 = vsel %vm600_vm5, %v599_v14, 0.0 }
 0x222   : > { %v1502_v44 = vadd.f32 %v1032_v41, %v614_v11  ;;  %v620_v46 = vrot.slane %v619_v42, 1  ;;  %v623_v47 = vrot.slane %v622_v43, 4 }
 0x224   : > { %v621_v49 = vadd.f32 %v620_v46, %v619_v42  ;;  %v624_v50 = vadd.f32 %v623_v47, %v622_v43  ;;  %v686_v51 = vmul.f32 %v1502_v44, %v1502_v44  ;;  %v642_v59 = vmul.f32 0.5, %v1502_v44  ;;  %v638_v47 = vld [vmem:[%s1441_s9 + $0x1] sm:$0x1] }
 0x225   : > { %v682_v18 = vadd.f32 1.0, %v1502_v44  ;;  %v749_v38 = vrot.slane %v1502_v44, 7 }
 0x226   : > { %v1506_v26 = vadd.f32 %v1032_v41, %v621_v49  ;;  %v625_v52 = vrot.slane %v624_v50, 2  ;;  %695 = vrot.lane.b32.xlu1 %v686_v51, %s1260_s12  ;;  %v647_v0 = vmul.f32 1.442695, %v642_v59  ;;  %v639_v51 = vld [vmem:[%s1441_s9 + $0x2] sm:$0x1] }
 0x227   : > { %v750_v40 = vsel %vm718_vm6, %v749_v38, %v1514_v61 }
 0x228   : > { %v626_v55 = vadd.f32 %v625_v52, %v624_v50  ;;  %v687_v56 = vmul.f32 %v1506_v26, %v1506_v26  ;;  %v643_v60 = vmul.f32 0.5, %v1506_v26  ;;  %1049 = vpow2.f32 %v647_v0 }
 0x229   : > { %v683_v15 = vadd.f32 1.0, %v1506_v26  ;;  %v751_v39 = vrot.slane %v1506_v26, 6 }
 0x22a   : > { %v627_v58 = vrot.slane %v626_v55, 1  ;;  %697 = vrot.lane.b32.xlu2 %v687_v56, %s1260_s12  ;;  %v649_v1 = vmul.f32 1.442695, %v643_v60 }
 0x22c   : > { %v628_v62 = vadd.f32 %v627_v58, %v626_v55  ;;  %1051 = vpow2.f32 %v649_v1  ;;  %v640_v55 = vld [vmem:[%s1441_s9 + $0x3] sm:$0x1]  ;;  %s1197_s9 = scalar_lea.hbm %s1600_s6, 8 }
 0x22d   : > { %p1199_p10 = scmp.lt.s32.totalorder %s1197_s9, %s1193_s7 }
 0x22e   : > { %v1516_v63 = vadd.f32 %v1032_v41, %v628_v62  ;;  %v1050_v7 = vpop.eup %1049  ;;  %v752_v41 = vsel %vm721_vm7, %v751_v39, %v750_v40 }
 0x22f   : > { %v654_v3 = vmul.f32 %v1050_v7, %v1050_v7  ;;  %p1200_p11 = por %p1199_p10, %p1198_p2 }
 0x230   : > { %v688_v2 = vmul.f32 %v1516_v63, %v1516_v63  ;;  %v644_v4 = vmul.f32 0.5, %v1516_v63  ;;  %v684_v32 = vadd.f32 1.0, %v1516_v63  ;;  %v753_v14 = vrot.slane %v1516_v63, 5 }
 0x231   : > { %p1201_p9 = pnand %p1200_p11, %p1196_p8 }
 0x232   : > { %699 = vrot.lane.b32.xlu0 %v688_v2, %s1260_s12  ;;  %693 = vrot.lane.b32.xlu2 %v685_v45, %s1260_s12  ;;  %v651_v5 = vmul.f32 1.442695, %v644_v4  ;;  %v1052_v8 = vpop.eup %1051  ;;  %v754_v11 = vsel %vm724_vm8, %v753_v14, %v752_v41 }
 0x233   : > { %v655_v19 = vmul.f32 %v1052_v8, %v1052_v8 }
 0x234   : > { %1053 = vpow2.f32 %v651_v5 }
 0x235   : > { %1055 = vpow2.f32 %v645_v13 }
 0x23a   : > { %665 = vrot.lane.b32.xlu0 %v1052_v8, %s1261_s4  ;;  %663 = vrot.lane.b32.xlu2 %v1050_v7, %s1261_s4  ;;  %v1054_v9 = vpop.eup %1053 }
 0x23b   : > { %v1056_v53 = vpop.eup %1055  ;;  %v656_v34 = vmul.f32 %v1054_v9, %v1054_v9 }
 0x23c   : > { %v653_v24 = vmul.f32 %v1056_v53, %v1056_v53 }
 0x242   : > { %667 = vrot.lane.b32.xlu2 %v1054_v9, %s1261_s4 }
 0x284   : > { %v698_v12 = vpop.permute.xlu2 %697 }
 0x285   : > { %v707_v57 = vsub.f32 %v683_v15, %v698_v12 }
 0x287   : > { %v711_v23 = vsub.f32 %v707_v57, %v655_v19 }
 0x289   : > { %v720_v29 = vrot.slane %v711_v23, 6 }
 0x28c   : > { %v694_v16 = vpop.permute.xlu2 %693 }
 0x28d   : > { %v705_v21 = vsub.f32 %v681_v17, %v694_v16 }
 0x28f   : > { %v709_v27 = vsub.f32 %v705_v21, %v653_v24 }
 0x294   : > { %v664_v46 = vpop.permute.xlu2 %663 }
 0x295   : > { %v674_v50 = vmul.f32 %v664_v46, %v638_v47 }
 0x297   : > { %v678_v59 = vadd.f32 %v674_v50, %v1502_v44 }
 0x298   : > { %v696_v20 = vpop.permute.xlu1 %695 }
 0x299   : > { %v706_v22 = vsub.f32 %v682_v18, %v696_v20  ;;  %v738_v1 = vrot.slane %v678_v59, 7 }
 0x29b   : > { %v710_v25 = vsub.f32 %v706_v22, %v654_v3 }
 0x29c   : > { %v668_v56 = vpop.permute.xlu2 %667 }
 0x29d   : > { %v717_v28 = vrot.slane %v710_v25, 7  ;;  %v676_v60 = vmul.f32 %v668_v56, %v640_v55 }
 0x29f   : > { %v719_v30 = vsel %vm718_vm6, %v717_v28, %v709_v27  ;;  %v680_v2 = vadd.f32 %v676_v60, %v1516_v63 }
 0x2a0   : > { %v722_v31 = vsel %vm721_vm7, %v720_v29, %v719_v30 }
 0x2a1   : > { %v742_v7 = vrot.slane %v680_v2, 5 }
 0x2a4   : > { %v700_v33 = vpop.permute.xlu0 %699 }
 0x2a5   : > { %v708_v6 = vsub.f32 %v684_v32, %v700_v33 }
 0x2a7   : > { %v712_v35 = vsub.f32 %v708_v6, %v656_v34 }
 0x2a9   : > { %v723_v36 = vrot.slane %v712_v35, 5 }
 0x2ab   : > { %v725_v37 = vsel %vm724_vm8, %v723_v36, %v722_v31 }
 0x2ac   : > { %726 = vrot.lane.b32.xlu1 %v725_v37, %s1261_s4  ;;  %v666_v52 = vpop.permute.xlu0 %665 }
 0x2ad   : > { %v675_v58 = vmul.f32 %v666_v52, %v639_v51 }
 0x2af   : > { %v679_v0 = vadd.f32 %v675_v58, %v1506_v26 }
 0x2b1   : > { %v740_v4 = vrot.slane %v679_v0, 6 }
 0x2b4   : > { %661 = vrot.lane.b32.xlu1 %v1056_v53, %s1261_s4 }
 0x2bc   : > { %755 = vrot.lane.b32.xlu1 %v754_v11, %s1260_s12 }
 0x31e   : > { %v727_v42 = vpop.permute.xlu1 %726 }
 0x31f   : > { %v730_v43 = vsel %vm729_vm9, %v727_v42, 0.0 }
 0x320   : > { %731 = vadd.xlane.f32.xlu0 %v730_v43 }
 0x326   : > { %v662_v49 = vpop.permute.xlu1 %661 }
 0x327   : > { %v673_v54 = vmul.f32 %v662_v49, %v637_v48 }
 0x329   : > { %v677_v62 = vadd.f32 %v673_v54, %v1514_v61 }
 0x32b   : > { %v739_v45 = vsel %vm718_vm6, %v738_v1, %v677_v62 }
 0x32c   : > { %v741_v5 = vsel %vm721_vm7, %v740_v4, %v739_v45 }
 0x32d   : > { %v743_v8 = vsel %vm724_vm8, %v742_v7, %v741_v5 }
 0x32e   : > { %v756_v9 = vpop.permute.xlu1 %755 }
 0x32f   : > { %v758_v61 = vsel %vm378_vm0, %v743_v8, %v756_v9 }
 0x393   : > { %v732_v44 = vpop.xlane.xlu0 %731 }
 0x394   : > { %v733_v26 = vmul.f32 -0.5, %v732_v44 }
 0x396   : > { %v759_v63 = vsel %vm600_vm5, %v758_v61, %v733_v26 }
 0x397   : > { %v761_v10 = vrot.slane %v759_v63, 1  ;;  %v762_v12 = vrot.slane %v759_v63, 2  ;;  %v763_v13 = vrot.slane %v759_v63, 3  ;;  %768 = vst.msk [vmem:[%s343_s23] sm:$0x1] %vm767_vm10, %v759_v63 }
 0x399   : > { %769 = vst.msk [vmem:[%s343_s23 + $0x1] sm:$0x1] %vm767_vm10, %v761_v10 }
 0x39a   : > { %770 = vst.msk [vmem:[%s343_s23 + $0x2] sm:$0x1] %vm767_vm10, %v762_v12 }
 0x39b   : > { %771 = vst.msk [vmem:[%s343_s23 + $0x3] sm:$0x1] %vm767_vm10, %v763_v13 }
 0x39c   : > { %1204 = shalt.err (!%p1201_p9)
}
 0x39d   : > { %s1262_s29 = smov 16   ;;  %s1263_s10 = smov 1  }
 0x39e   : > { %962 = dma.vmem_to_hbm [thread:$0]  (%p1368_p3), %s785_s18, 64, %s787_s30, %s773_s25, %s1262_s29, %s1262_s29, %s1263_s10  }
 0x39f PF: > { %s801_s27 = sand.u32 1, %s1239_s21   ;;  %p1620_p12 = scmp.ge.s32.totalorder %s1251_s24, 2 }
 0x3a0   : > { %s802_s11 = scalar_lea.sflag [#allocation4], %s801_s27 }
 0x3a1   : > { %p979_p13 = pnand %p1620_p12, %p1334_p6 }
 0x3a3   : > { %p980_p0 = pneg %p979_p13 }
 0x3a5   : > { %1234 = dma.done.wait (%p980_p0), %s802_s11, 64  }
 0x3a6   : > { %1236 = vsyncadd (%p980_p0), %s802_s11, 4294967232  ;;  %s1621_s24 = sld [smem:[#allocation16_spill]]  ;;  %s1624_s21 = smov %s1243_s22 }
 0x3a7   : > { %s1622_s12 = sld [smem:[#allocation15_spill]] }
 0x3a8   : > { %s1623_s23 = sld [smem:[#allocation17_spill]] }
 0x3ac   : > { %p23_p5 = scmp.ge.s32.totalorder %s1621_s24, 4  }
 0x3ad   : > { %s1625_s22 = smov %s1622_s12 }
 0x3ae   :  { %25 = sbr.rel (!%p23_p5) target bundleno = 11 (0xb), region = 110 }
 0x3b3   :  { %808 = vsyncpa [#allocation3], 1 }
 0x3b4   :  { %810 = vsyncpa [#allocation3 + $0x1], 1 }
 0x3b5   :  { %811 = vsyncpa [#allocation6], 1 }
 0x3b6   :  { %812 = vsyncpa [#allocation9], 1 }
 0x3b7   :  { %814 = vsyncpa [#allocation9 + $0x1], 1 }
 0x3b8   :  { %815 = vsyncpa [#allocation4], 1 }
 0x3b9   :  { %817 = vsyncpa [#allocation4 + $0x1], 1 }

</bundles_post_ra>
